<compile_context>
chip_gen: v6e
topology: v6e:2x2x1
jax: 0.10.0
libtpu: 0.0.40
codegen_flags: <defaults>
</compile_context>

<pallas_src>
import math

import jax
import jax.numpy as jnp
from jax.experimental import pallas as pl
from jax.experimental.pallas import tpu as pltpu

LATENT_DIM = 30
# Matches Noise.__init__: hidden_layers=[50, 100, latent_dim] with latent_dim inserted at 0.
HIDDEN_LAYERS = [LATENT_DIM, 50, 100, LATENT_DIM]

TILE_B_MAX = 4096            # ~8 MiB double-buffered (in+out, 128-lane padded): fits the
                             # v5e 16 MiB scoped-VMEM default; v6e/v7x can pass tile_b=8192.
SMALL_BATCH_THRESHOLD = 4096 # below this, plain XLA beats pallas_call dispatch overhead.


def affine_kernel(x_ref, w_ref, b_ref, o_ref):
    # Single MXU matmul with f32 accumulation + VPU bias add per batch tile.
    o_ref[...] = (
        jnp.dot(x_ref[...], w_ref[...], preferred_element_type=jnp.float32)
        + b_ref[...]
    ).astype(o_ref.dtype)


def fold_params(params):
    """Collapse the activation-free Linear chain into one (W_eff, b_eff) affine map."""
    (w_eff, b_eff) = params[0]
    for w, b in params[1:]:
        w_eff = w_eff @ w          # (in, out_prev) @ (out_prev, out) -> (in, out)
        b_eff = b_eff @ w + b      # (1, out_prev) @ (out_prev, out) + (1, out)
    return w_eff, b_eff


def _round_up(n, m):
    return ((n + m - 1) // m) * m


def noise_forward(
    x,
    params,
    *,
    tile_b=TILE_B_MAX,
    small_batch_threshold=SMALL_BATCH_THRESHOLD,
    force_pallas=False,
    core_parallel=False,   # set True on v7x to shard the batch grid across both TCs
):
    """params: list of (W, b) with W shaped (in, out), b shaped (1, out)."""
    B = x.shape[0]
    w_eff, b_eff = fold_params(params)           # done once, in plain JAX
    in_dim, out_dim = w_eff.shape

    # Small-batch fast path: the folded affine is something XLA fuses trivially,
    # and pallas_call dispatch + per-step overhead dominates at these sizes.
    if B <= small_batch_threshold and not force_pallas:
        return x @ w_eff + b_eff

    tb = min(tile_b, B)                          # (tb, in_dim): tb%8==0 for large B,
    grid = (pl.cdiv(B, tb),)                     # else tb == B (full-dim block is legal)

    # Scoped-VMEM budget: double-buffered, 128-lane-padded input + output tiles
    # plus headroom. Keeps tb=8192 legal on v5e's 16 MiB default without flags.
    vmem_need = 2 * 4 * tb * (_round_up(in_dim, 128) + _round_up(out_dim, 128))
    vmem_limit = max(vmem_need + (4 << 20), 16 << 20)

    cost = pl.CostEstimate(
        flops=2 * B * in_dim * out_dim,
        transcendentals=0,
        bytes_accessed=4 * (B * in_dim + B * out_dim + in_dim * out_dim + out_dim),
    )

    dim_sem = (pltpu.CORE_PARALLEL,) if core_parallel else ("parallel",)

    return pl.pallas_call(
        affine_kernel,
        out_shape=jax.ShapeDtypeStruct((B, out_dim), jnp.float32),
        grid_spec=pltpu.PrefetchScalarGridSpec(
            num_scalar_prefetch=0,
            grid=grid,
            in_specs=[
                # Batch-tiled input: auto double-buffered, DMA overlaps (tiny) compute.
                pl.BlockSpec((tb, in_dim), lambda i: (i, 0)),
                # Weights/bias: constant index_map -> fetched once, VMEM-resident.
                pl.BlockSpec((in_dim, out_dim), lambda i: (0, 0)),
                pl.BlockSpec((1, out_dim), lambda i: (0, 0)),
            ],
            out_specs=pl.BlockSpec((tb, out_dim), lambda i: (i, 0)),
        ),
        compiler_params=pltpu.CompilerParams(
            dimension_semantics=dim_sem,
            vmem_limit_bytes=vmem_limit,
        ),
        cost_estimate=cost,
    )(x, w_eff, b_eff)


def init_params(key):
    """Deterministic init mimicking torch.nn.Linear default (uniform +/- 1/sqrt(fan_in))."""
    params = []
    for i in range(len(HIDDEN_LAYERS) - 1):
        fan_in, fan_out = HIDDEN_LAYERS[i], HIDDEN_LAYERS[i + 1]
        key, kw, kb = jax.random.split(key, 3)
        bound = 1.0 / math.sqrt(fan_in)
        # Stored already transposed to (in, out) so forward computes x @ W + b.
        w = jax.random.uniform(kw, (fan_in, fan_out), jnp.float32, -bound, bound)
        b = jax.random.uniform(kb, (1, fan_out), jnp.float32, -bound, bound)
        params.append((w, b))
    return params


def reference_forward(x, params):
    # Unfused sequential application — mirrors the PyTorch module exactly.
    h = x
    for w, b in params:
        h = h @ w + b
    return h


if __name__ == "__main__":
    key = jax.random.PRNGKey(0)
    key, kx = jax.random.split(key)

    B = 64
    x = jax.random.normal(kx, (B, LATENT_DIM), jnp.float32)
    params = init_params(key)

    ref = reference_forward(x, params)

    # 1) Exercise the Pallas kernel itself (bypass the small-batch XLA fast path).
    out_pallas = jax.block_until_ready(noise_forward(x, params, force_pallas=True))
    assert out_pallas.shape == (B, HIDDEN_LAYERS[-1]), out_pallas.shape
    # Folding reassociates the f32 matmul chain; allow tiny reassociation error.
    assert jnp.allclose(out_pallas, ref, atol=1e-4, rtol=1e-4), (
        float(jnp.max(jnp.abs(out_pallas - ref)))
    )

    # 2) Default dispatch at this batch size takes the small-batch XLA fast path.
    out_fast = jax.block_until_ready(noise_forward(x, params))
    assert jnp.allclose(out_fast, ref, atol=1e-4, rtol=1e-4), (
        float(jnp.max(jnp.abs(out_fast - ref)))
    )

    print("KERNEL_OK")
</pallas_src>

<mosaic_0001>
module attributes {stable_mosaic.version = 11 : i64} {
  func.func @affine_kernel(%arg0: i32, %arg1: memref<64x30xf32, #tpu.memory_space<vmem>>, %arg2: memref<30x30xf32, #tpu.memory_space<vmem>>, %arg3: memref<1x30xf32, #tpu.memory_space<vmem>>, %arg4: memref<64x30xf32, #tpu.memory_space<vmem>>) attributes {dimension_semantics = [#tpu.dimension_semantics<parallel>], iteration_bounds = array<i64: 1>, scalar_prefetch = 0 : i64, scratch_operands = 0 : i64, tpu.core_type = #tpu.core_type<tc>, window_params = [{transform_indices = @transform_0, window_bounds = array<i64: 64, 30>}, {pipeline_mode = #tpu.pipeline_mode<synchronous>, transform_indices = @transform_1, window_bounds = array<i64: 30, 30>}, {pipeline_mode = #tpu.pipeline_mode<synchronous>, transform_indices = @transform_2, window_bounds = array<i64: 1, 30>}, {transform_indices = @transform_3, window_bounds = array<i64: 64, 30>}]} {
    %c0 = arith.constant 0 : index
    %c0_0 = arith.constant 0 : index
    %0 = vector.load %arg1[%c0, %c0_0] : memref<64x30xf32, #tpu.memory_space<vmem>>, vector<64x30xf32>
    %c0_1 = arith.constant 0 : index
    %c0_2 = arith.constant 0 : index
    %1 = vector.load %arg2[%c0_1, %c0_2] : memref<30x30xf32, #tpu.memory_space<vmem>>, vector<30x30xf32>
    %cst = arith.constant dense<0.000000e+00> : vector<64x30xf32>
    %2 = tpu.matmul %0, %1, %cst {dimension_numbers = #tpu.dot_dimension_numbers<[1], [0], [0], [1], [0, 0, 1, 1], [], []>} : vector<64x30xf32>, vector<30x30xf32>, vector<64x30xf32> -> vector<64x30xf32>
    %c0_3 = arith.constant 0 : index
    %c0_4 = arith.constant 0 : index
    %3 = vector.load %arg3[%c0_3, %c0_4] : memref<1x30xf32, #tpu.memory_space<vmem>>, vector<1x30xf32>
    %4 = vector.broadcast %3 : vector<1x30xf32> to vector<64x30xf32>
    %5 = arith.addf %2, %4 : vector<64x30xf32>
    %c0_5 = arith.constant 0 : index
    %c0_6 = arith.constant 0 : index
    %6 = vector.load %arg4[%c0_5, %c0_6] : memref<64x30xf32, #tpu.memory_space<vmem>>, vector<64x30xf32>
    tpu.vector_store %arg4[%c0_5, %c0_6], %5 {strides = array<i32>} : memref<64x30xf32, #tpu.memory_space<vmem>>, vector<64x30xf32>,
    return
  }
  func.func @transform_0(%arg0: i32) -> (i32, i32) {
    %c0_i32 = arith.constant 0 : i32
    %c0_i32_0 = arith.constant 0 : i32
    return %arg0, %c0_i32 : i32, i32
  }
  func.func @transform_1(%arg0: i32) -> (i32, i32) {
    %c0_i32 = arith.constant 0 : i32
    %c0_i32_0 = arith.constant 0 : i32
    %c0_i32_1 = arith.constant 0 : i32
    return %c0_i32, %c0_i32_0 : i32, i32
  }
  func.func @transform_2(%arg0: i32) -> (i32, i32) {
    %c0_i32 = arith.constant 0 : i32
    %c0_i32_0 = arith.constant 0 : i32
    %c0_i32_1 = arith.constant 0 : i32
    return %c0_i32, %c0_i32_0 : i32, i32
  }
  func.func @transform_3(%arg0: i32) -> (i32, i32) {
    %c0_i32 = arith.constant 0 : i32
    %c0_i32_0 = arith.constant 0 : i32
    return %arg0, %c0_i32 : i32, i32
  }
}

</mosaic_0001>

<bundles_post_ra>
// kernel: tpu_custom_call.1
= control target key start
LH: loop header
LB: loop body
LE: loop exit
PB: predicated region body
PF: predicated region fallthrough
CT: control target
= control target key end

     0   :  { %vm58_vm0 = vcmask 1045504   ;;  %vm33_vm1 = vcmask 244736   ;;  %s328_s1 = inlined_call_operand.vmem [shape: f32[30,30], index: 1, kind: input, shape index: {}]   ;;  %s329_s0 = inlined_call_operand.vmem [shape: f32[64,30], index: 0, kind: input, shape index: {}]   ;;  %s330_s2 = inlined_call_operand.vmem [shape: f32[1,30], index: 2, kind: input, shape index: {}]   ;;  %s331_s3 = inlined_call_operand.vmem [shape: f32[64,30], index: 3, kind: output, shape index: {}]  }
   0x1   :  { %v25_v0 = vld [vmem:[%s328_s1 + $0x18] sm:$0x3f]  ;;  %v24_v1 = vld [vmem:[%s328_s1 + $0x10] sm:$0xff]  ;;  %v23_v2 = vld [vmem:[%s328_s1 + $0x8] sm:$0xff] }
   0x2   :  { %201 = vmatprep.subr.msk.mxu0 %vm58_vm0, %v25_v0  ;;  %221 = vmatprep.subr.msk.mxu1 %vm58_vm0, %v25_v0  ;;  %v22_v3 = vld [vmem:[%s328_s1] sm:$0xff]  ;;  %v15_v6 = vld [vmem:[%s329_s0 + $0x8] sm:$0xff]  ;;  %v16_v8 = vld [vmem:[%s329_s0 + $0x10] sm:$0xff] }
   0x3   :  { %202 = vmatpush3.msk.msra.mxu0 %vm58_vm0, %v25_v0  ;;  %225 = vmatpush3.msk.msra.mxu1 %vm58_vm0, %v25_v0  ;;  %v14_v4 = vld [vmem:[%s329_s0] sm:$0xff]  ;;  %v19_v7 = vld [vmem:[%s329_s0 + $0x28] sm:$0xff]  ;;  %v20_v9 = vld [vmem:[%s329_s0 + $0x30] sm:$0xff] }
   0x4   :  { %203 = vmatprep.subr.mxu0 %v24_v1  ;;  %222 = vmatprep.subr.mxu1 %v24_v1  ;;  %v18_v5 = vld [vmem:[%s329_s0 + $0x20] sm:$0xff]  ;;  %v17_v10 = vld [vmem:[%s329_s0 + $0x18] sm:$0xff] }
   0x5   :  { %204 = vmatpush3.msra.mxu0 %v24_v1  ;;  %226 = vmatpush3.msra.mxu1 %v24_v1  ;;  %v21_v11 = vld [vmem:[%s329_s0 + $0x38] sm:$0xff]  ;;  %v179_v12 = vld [vmem:[%s330_s2] ss:$0 sm:$0xff] }
   0x6   :  { %205 = vmatprep.subr.mxu0 %v23_v2  ;;  %223 = vmatprep.subr.mxu1 %v23_v2 }
   0x7   :  { %206 = vmatpush3.msra.mxu0 %v23_v2  ;;  %227 = vmatpush3.msra.mxu1 %v23_v2 }
   0x8   :  { %207 = vmatprep.subr.mxu0 %v22_v3  ;;  %224 = vmatprep.subr.mxu1 %v22_v3 }
   0x9   :  { %208 = vmatpush3.msra.mxu0 %v22_v3  ;;  %228 = vmatpush3.msra.mxu1 %v22_v3 }
   0xa   :  { %209 = vmatprep.mubr.msk.f32.mxu0 %vm33_vm1, %v14_v4  ;;  %215 = vmatprep.mubr.msk.f32.mxu1 %vm33_vm1, %v18_v5 }
   0xb   :  { %210 = vmatmul.mubr.msk.f32.vlgmr.msra.gmra.mxu0 %vm33_vm1, %v15_v6  ;;  %216 = vmatmul.mubr.msk.f32.vlgmr.msra.gmra.mxu1 %vm33_vm1, %v19_v7 }
   0xc   :  { %212 = vmatprep.mubr.msk.f32.mxu0 %vm33_vm1, %v16_v8  ;;  %218 = vmatprep.mubr.msk.f32.mxu1 %vm33_vm1, %v20_v9 }
   0xf   :  { %213 = vmatmul.mubr.msk.f32.gmra.mxu0 %vm33_vm1, %v17_v10  ;;  %219 = vmatmul.mubr.msk.f32.gmra.mxu1 %vm33_vm1, %v21_v11 }
  0xcb   :  { %v211_v13 = vpop.f32.mrf.mxu0  ;;  %v217_v14 = vpop.f32.mrf.mxu1 }
  0xcc   :  { %v134_v15 = vadd.f32 %v211_v13, %v179_v12  ;;  %v154_v16 = vadd.f32 %v217_v14, %v179_v12 }
  0xcd   :  { %v128_v17 = vpop.f32.mrf.mxu0  ;;  %v148_v18 = vpop.f32.mrf.mxu1 }
  0xce   :  { %168 = vst.msk [vmem:[%s331_s3 + $0x8] sm:$0xff] %vm33_vm1, %v134_v15  ;;  %172 = vst.msk [vmem:[%s331_s3 + $0x28] sm:$0xff] %vm33_vm1, %v154_v16  ;;  %v129_v19 = vadd.f32 %v179_v12, %v128_v17  ;;  %v149_v20 = vadd.f32 %v179_v12, %v148_v18 }
  0xcf   :  { %v214_v21 = vpop.f32.mrf.mxu0  ;;  %v220_v22 = vpop.f32.mrf.mxu1 }
  0xd0   :  { %167 = vst.msk [vmem:[%s331_s3] sm:$0xff] %vm33_vm1, %v129_v19  ;;  %171 = vst.msk [vmem:[%s331_s3 + $0x20] sm:$0xff] %vm33_vm1, %v149_v20  ;;  %v144_v23 = vadd.f32 %v214_v21, %v179_v12  ;;  %v164_v24 = vadd.f32 %v220_v22, %v179_v12 }
  0xd1   :  { %v138_v25 = vpop.f32.mrf.mxu0  ;;  %v158_v26 = vpop.f32.mrf.mxu1 }
  0xd2   :  { %170 = vst.msk [vmem:[%s331_s3 + $0x18] sm:$0xff] %vm33_vm1, %v144_v23  ;;  %174 = vst.msk [vmem:[%s331_s3 + $0x38] sm:$0xff] %vm33_vm1, %v164_v24  ;;  %v139_v27 = vadd.f32 %v179_v12, %v138_v25  ;;  %v159_v28 = vadd.f32 %v179_v12, %v158_v26 }
  0xd4   :  { %169 = vst.msk [vmem:[%s331_s3 + $0x10] sm:$0xff] %vm33_vm1, %v139_v27  ;;  %173 = vst.msk [vmem:[%s331_s3 + $0x30] sm:$0xff] %vm33_vm1, %v159_v28 }

</bundles_post_ra>
